<compile_context>
chip_gen: v6e
topology: v6e:2x2x1
jax: 0.10.0
libtpu: 0.0.40
codegen_flags: <defaults>
</compile_context>

<pallas_src>
import jax
import jax.numpy as jnp
from jax import lax
from jax.experimental import pallas as pl
from jax.experimental.pallas import tpu as pltpu


# ---------------------------------------------------------------------------
# Tuning knobs
# ---------------------------------------------------------------------------
# Fast (one-hot) path: table + one-hot tile + double-buffered output must stay
# within scoped VMEM (v5e default 16 MiB is the binding constraint; v7x has
# 64 MiB physical).  bf16 tables are allowed to be twice as large since both
# the resident table and the one-hot intermediate halve.
_FAST_PATH_MAX_TABLE_BYTES_F32 = 4 * 1024 * 1024
_FAST_PATH_MAX_TABLE_BYTES_BF16 = 8 * 1024 * 1024
# NOTE(v5e): with only 197 TF/s and a single vst slot the one-hot path loses
# to the row-gather path earlier; lower this to ~1024-2048 on v5e fleets.
_FAST_PATH_MAX_VOCAB = 4096
_FAST_PATH_BLOCK_ROWS = 512        # tokens gathered per grid step

# General (large-vocab) path: batched manual row-gather DMAs from HBM.
# v6e/v7x: 32-wide waves, 2 in flight (64 outstanding row copies).  On v7x
# (3.2 TB/s HBM, 2 TCs) these can be pushed further (64-wide waves, 3 slots).
_DMA_BLOCK_ROWS = 512              # tokens gathered per grid step
_DMA_WAVE = 32                     # concurrent row DMAs per wave (2 waves in flight)


def _round_up(x, m):
    return ((x + m - 1) // m) * m


def _sublane_granule(itemsize):
    # Min second-minor tile: f32 -> 8, bf16 -> 16, int8/fp8 -> 32.
    if itemsize >= 4:
        return 8
    if itemsize == 2:
        return 16
    return 32


# ---------------------------------------------------------------------------
# Kernels
# ---------------------------------------------------------------------------
def _embedding_onehot_kernel(idx_ref, table_ref, out_ref):
    """Small-vocab path: table VMEM-resident; gather = one_hot(idx) @ table.

    The one-hot is built in the *table* dtype: for bf16 tables both MXU
    operands are bf16 (native pass, exact since entries are 0/1) with an f32
    accumulator; for f32 tables semantics are preserved with the (emulated)
    f32 matmul.
    """
    idx = idx_ref[...]                                        # (b, 1) int32
    b = idx.shape[0]
    vocab = table_ref.shape[0]
    iota = lax.broadcasted_iota(jnp.int32, (b, vocab), 1)     # (b, V)
    onehot = (iota == idx).astype(table_ref.dtype)            # exact 0/1
    out_ref[...] = jnp.dot(
        onehot, table_ref[...], preferred_element_type=jnp.float32
    ).astype(out_ref.dtype)


def _embedding_dma_kernel(idx_ref, table_hbm, out_ref, sems):
    """Large-vocab path: per-row HBM gathers DMA'd straight into out_ref.

    idx_ref   : (n_pad,) int32 in SMEM (scalar prefetch)
    table_hbm : (V, dim_pad) ref left in HBM (memory_space=pl.ANY)
    out_ref   : (b, dim_pad) output block in VMEM -- DMA destination
    sems      : (2, _DMA_WAVE) DMA semaphores (double-buffered waves)
    """
    block_rows = out_ref.shape[0]
    base = pl.program_id(0) * block_rows
    num_waves = block_rows // _DMA_WAVE          # static python int

    def read_indices(w):
        # SMEM scalar reads for one wave; issued ahead of any DMA wait.
        return [idx_ref[base + w * _DMA_WAVE + r] for r in range(_DMA_WAVE)]

    def start_wave(w, slot, rows):
        for r in range(_DMA_WAVE):               # static unroll
            j = w * _DMA_WAVE + r
            pltpu.make_async_copy(
                table_hbm.at[pl.ds(rows[r], 1), :],
                out_ref.at[pl.ds(j, 1), :],      # gather directly into output
                sems.at[slot, r],
            ).start()

    def wait_wave(w, slot):
        for r in range(_DMA_WAVE):
            j = w * _DMA_WAVE + r
            pltpu.make_async_copy(
                table_hbm.at[pl.ds(0, 1), :],    # dummy src: shape/size only
                out_ref.at[pl.ds(j, 1), :],
                sems.at[slot, r],
            ).wait()

    # Prime wave 0.
    start_wave(0, 0, read_indices(0))

    @pl.loop(0, num_waves)
    def _(w):
        slot = w & 1

        @pl.when(w + 1 < num_waves)
        def _():
            # Read next wave's indices and launch its DMAs *before* waiting on
            # the current wave: keeps ~2*_DMA_WAVE row copies in flight and
            # keeps the scalar SMEM reads ahead of the DMA waits.
            start_wave(w + 1, 1 - slot, read_indices(w + 1))

        wait_wave(w, slot)
    # All rows of out_ref were written by DMAs above; Pallas writes the block
    # back to HBM after the body.


# ---------------------------------------------------------------------------
# pallas_call wrappers for each path
# ---------------------------------------------------------------------------
def _onehot_lookup(flat_idx, table, b):
    n = flat_idx.shape[0]
    vocab, dim_pad = table.shape
    itemsize = table.dtype.itemsize
    n_pad = _round_up(n, b)
    idx2d = jnp.pad(flat_idx, (0, n_pad - n)).reshape(n_pad, 1)

    # VMEM budget: double-buffered table + one-hot intermediate + out/idx blocks.
    budget = (2 * vocab * dim_pad * itemsize
              + b * vocab * max(itemsize, 2)
              + 2 * b * dim_pad * itemsize
              + 2 * b * 128 * 4)
    vmem_limit = int(min(64 << 20, max(16 << 20, budget + (2 << 20))))

    return pl.pallas_call(
        _embedding_onehot_kernel,
        out_shape=jax.ShapeDtypeStruct((n_pad, dim_pad), table.dtype),
        grid_spec=pltpu.PrefetchScalarGridSpec(
            num_scalar_prefetch=0,
            grid=(n_pad // b,),
            in_specs=[
                pl.BlockSpec((b, 1), lambda i: (i, 0)),
                # Constant index_map => the table is DMA'd into VMEM once per
                # core and reused for every grid step.
                pl.BlockSpec((vocab, dim_pad), lambda i: (0, 0)),
            ],
            out_specs=pl.BlockSpec((b, dim_pad), lambda i: (i, 0)),
        ),
        compiler_params=pltpu.CompilerParams(
            dimension_semantics=("parallel",),
            vmem_limit_bytes=vmem_limit),
    )(idx2d, table)


def _dma_lookup(flat_idx, table, b):
    n = flat_idx.shape[0]
    _, dim_pad = table.shape
    n_pad = _round_up(n, b)
    idx_pad = jnp.pad(flat_idx, (0, n_pad - n))

    return pl.pallas_call(
        _embedding_dma_kernel,
        out_shape=jax.ShapeDtypeStruct((n_pad, dim_pad), table.dtype),
        grid_spec=pltpu.PrefetchScalarGridSpec(
            num_scalar_prefetch=1,                       # indices -> SMEM
            grid=(n_pad // b,),
            in_specs=[pl.BlockSpec(memory_space=pl.ANY)],  # table stays in HBM
            out_specs=pl.BlockSpec((b, dim_pad), lambda i, idx: (i, 0)),
            scratch_shapes=[pltpu.SemaphoreType.DMA((2, _DMA_WAVE))],
        ),
        compiler_params=pltpu.CompilerParams(
            dimension_semantics=("parallel",)),
    )(idx_pad, table)


# ---------------------------------------------------------------------------
# Public wrapper
# ---------------------------------------------------------------------------
def embedding_lookup(indices, table, *, block_rows=None, path=None):
    """out[i] = table[indices[i]] with torch.nn.Embedding semantics.

    path: None (auto by table size), "onehot" (force fast path) or "dma"
    (force HBM row-gather path).
    """
    orig_shape = indices.shape
    vocab, dim = table.shape
    itemsize = table.dtype.itemsize

    flat = indices.reshape(-1).astype(jnp.int32)
    # nn.Embedding raises on out-of-range indices; clamping is the closest
    # practical TPU behaviour (no runtime OOB checks on refs).
    flat = jnp.clip(flat, 0, vocab - 1)
    n = flat.shape[0]

    # Lane-dense embedding dim: pad to a multiple of 128 so output stores and
    # per-row DMAs are full-lane (unmasked vst); sliced back below.
    dim_pad = _round_up(dim, 128)
    if dim_pad != dim:
        table = jnp.pad(table, ((0, 0), (0, dim_pad - dim)))

    table_bytes = vocab * dim * itemsize
    max_fast_bytes = (_FAST_PATH_MAX_TABLE_BYTES_BF16 if itemsize <= 2
                      else _FAST_PATH_MAX_TABLE_BYTES_F32)
    if path is None:
        use_onehot = (table_bytes <= max_fast_bytes
                      and vocab <= _FAST_PATH_MAX_VOCAB)
    else:
        use_onehot = (path == "onehot")

    if use_onehot:
        granule = _sublane_granule(itemsize)
        if block_rows is None:
            b = _FAST_PATH_BLOCK_ROWS
            # Cap so the grid has >= 2 steps when possible: lets the
            # "parallel" axis shard across both TensorCores on v7x.
            b = min(b, max(granule, _round_up(pl.cdiv(n, 2), granule)))
        else:
            b = block_rows
        b = max(granule, min(_round_up(b, granule), 1024))
        out = _onehot_lookup(flat, table, b)
    else:
        if block_rows is None:
            b = _DMA_BLOCK_ROWS
            b = min(b, max(_DMA_WAVE, _round_up(pl.cdiv(n, 2), _DMA_WAVE)))
        else:
            b = block_rows
        b = max(_DMA_WAVE, _round_up(b, _DMA_WAVE))
        # Keep the double-buffered output blocks modest in VMEM (v7x: 64 MiB).
        while b > _DMA_WAVE and 2 * b * dim_pad * itemsize > (8 << 20):
            b = max(_DMA_WAVE, _round_up(b // 2, _DMA_WAVE))
        # TODO(synk): sub-32-bit tables on this path would benefit from the
        # 2xbf16 -> u32 bitcast row-packing trick for the row DMAs.
        out = _dma_lookup(flat, table, b)

    return out[:n, :dim].reshape(orig_shape + (dim,))


class CustomEmbedding:
    """JAX/Pallas port of the PyTorch CustomEmbedding module."""

    # TODO(synk): spectral_norm weight reparameterization not implemented
    # (module default is spectral_norm=False).

    def __init__(self, num_embeddings, embedding_dim, key, dtype=jnp.float32):
        # nn.Embedding default init: weight ~ N(0, 1).
        # Perf: pass dtype=jnp.bfloat16 when downstream tolerates it -- the
        # one-hot gather then runs as a native bf16 MXU matmul (vs emulated
        # f32) and table/gather traffic halves.  Lookup stays exact.
        self.weight = jax.random.normal(
            key, (num_embeddings, embedding_dim)).astype(dtype)

    def __call__(self, input_ids):
        return embedding_lookup(input_ids, self.weight)


if __name__ == "__main__":
    num_embeddings = 16
    embedding_dim = 128
    batch, seq = 2, 8

    key = jax.random.PRNGKey(0)
    k_w, k_i, k_i2, k_i3 = jax.random.split(key, 4)

    # f32 module (matches nn.Embedding defaults exactly).
    module = CustomEmbedding(num_embeddings, embedding_dim, k_w)
    input_ids = jax.random.randint(
        k_i, (batch, seq), 0, num_embeddings, dtype=jnp.int32)

    out = jax.block_until_ready(module(input_ids))
    ref = module.weight[input_ids]
    assert out.shape == (batch, seq, embedding_dim)
    assert out.dtype == jnp.float32
    assert jnp.allclose(out, ref)

    # bf16-stored table: native bf16 MXU one-hot matmul (exact lookup).
    module_bf16 = CustomEmbedding(
        num_embeddings, embedding_dim, k_w, dtype=jnp.bfloat16)
    out_bf16 = jax.block_until_ready(module_bf16(input_ids))
    ref_bf16 = module_bf16.weight[input_ids]
    assert out_bf16.dtype == jnp.bfloat16
    assert jnp.allclose(out_bf16.astype(jnp.float32),
                        ref_bf16.astype(jnp.float32))

    # Multiple grid blocks + ragged tail (padding) on the fast path
    # (n=100 tokens, 64 rows per step -> grid of 2).
    ids2 = jax.random.randint(
        k_i2, (4, 25), 0, num_embeddings, dtype=jnp.int32)
    out2 = jax.block_until_ready(
        embedding_lookup(ids2, module.weight, block_rows=64))
    assert out2.shape == (4, 25, embedding_dim)
    assert jnp.allclose(out2, module.weight[ids2])

    # General (large-vocab) row-gather DMA path, forced on the small table:
    # n=120 tokens -> 2 grid blocks x 2 waves of 32 row DMAs each.
    ids3 = jax.random.randint(
        k_i3, (3, 40), 0, num_embeddings, dtype=jnp.int32)
    out3 = jax.block_until_ready(
        embedding_lookup(ids3, module.weight, path="dma"))
    assert out3.shape == (3, 40, embedding_dim)
    assert jnp.allclose(out3, module.weight[ids3])

    print("KERNEL_OK")
</pallas_src>

<mosaic_0001>
module attributes {stable_mosaic.version = 11 : i64} {
  func.func @_embedding_onehot_kernel(%arg0: i32, %arg1: memref<8x1xi32, #tpu.memory_space<vmem>>, %arg2: memref<16x128xf32, #tpu.memory_space<vmem>>, %arg3: memref<8x128xf32, #tpu.memory_space<vmem>>) attributes {dimension_semantics = [#tpu.dimension_semantics<parallel>], iteration_bounds = array<i64: 2>, scalar_prefetch = 0 : i64, scratch_operands = 0 : i64, tpu.core_type = #tpu.core_type<tc>, window_params = [{transform_indices = @transform_0, window_bounds = array<i64: 8, 1>}, {pipeline_mode = #tpu.pipeline_mode<synchronous>, transform_indices = @transform_1, window_bounds = array<i64: 16, 128>}, {transform_indices = @transform_2, window_bounds = array<i64: 8, 128>}]} {
    %c0 = arith.constant 0 : index
    %c0_0 = arith.constant 0 : index
    %0 = vector.load %arg1[%c0, %c0_0] : memref<8x1xi32, #tpu.memory_space<vmem>>, vector<8x1xi32>
    %1 = tpu.iota {dimensions = array<i32: 1>} : vector<8x16xi32>
    %2 = vector.broadcast %0 : vector<8x1xi32> to vector<8x16xi32>
    %3 = arith.cmpi eq, %1, %2 : vector<8x16xi32>
    %4 = arith.extui %3 : vector<8x16xi1> to vector<8x16xi32>
    %5 = arith.sitofp %4 : vector<8x16xi32> to vector<8x16xf32>
    %c0_1 = arith.constant 0 : index
    %c0_2 = arith.constant 0 : index
    %6 = vector.load %arg2[%c0_1, %c0_2] : memref<16x128xf32, #tpu.memory_space<vmem>>, vector<16x128xf32>
    %cst = arith.constant dense<0.000000e+00> : vector<8x128xf32>
    %7 = tpu.matmul %5, %6, %cst {dimension_numbers = #tpu.dot_dimension_numbers<[1], [0], [0], [1], [0, 0, 1, 1], [], []>} : vector<8x16xf32>, vector<16x128xf32>, vector<8x128xf32> -> vector<8x128xf32>
    %c0_3 = arith.constant 0 : index
    %c0_4 = arith.constant 0 : index
    %8 = vector.load %arg3[%c0_3, %c0_4] : memref<8x128xf32, #tpu.memory_space<vmem>>, vector<8x128xf32>
    tpu.vector_store %arg3[%c0_3, %c0_4], %7 {strides = array<i32>} : memref<8x128xf32, #tpu.memory_space<vmem>>, vector<8x128xf32>,
    return
  }
  func.func @transform_0(%arg0: i32) -> (i32, i32) {
    %c0_i32 = arith.constant 0 : i32
    %c0_i32_0 = arith.constant 0 : i32
    return %arg0, %c0_i32 : i32, i32
  }
  func.func @transform_1(%arg0: i32) -> (i32, i32) {
    %c0_i32 = arith.constant 0 : i32
    %c0_i32_0 = arith.constant 0 : i32
    %c0_i32_1 = arith.constant 0 : i32
    return %c0_i32, %c0_i32_0 : i32, i32
  }
  func.func @transform_2(%arg0: i32) -> (i32, i32) {
    %c0_i32 = arith.constant 0 : i32
    %c0_i32_0 = arith.constant 0 : i32
    return %arg0, %c0_i32 : i32, i32
  }
}

</mosaic_0001>

<bundles_post_ra>
// kernel: tpu_custom_call.1
= control target key start
LH: loop header
LB: loop body
LE: loop exit
PB: predicated region body
PF: predicated region fallthrough
CT: control target
= control target key end

     0   :  { %7 = vsyncpa [#allocation3], 0  ;;  %s549_s0 = inlined_call_operand.vmem [shape: s32[16,1], index: 0, kind: input, shape index: {}]   ;;  %s550_s1 = inlined_call_operand.vmem [shape: f32[16,128], index: 1, kind: input, shape index: {}]   ;;  %s551_s2 = inlined_call_operand.hbm [shape: f32[16,128], index: 2, kind: output, shape index: {}]  }
   0x1   :  { %9 = vsyncpa [#allocation3 + $0x1], 0  ;;  %s444_s9 = smov 0   ;;  %s446_s10 = smov 0  }
   0x2   :  { %s448_s11 = smov 0   ;;  %s450_s12 = smov 0  }
   0x3 LB: > { %s465_s13 = sadd.s32 4294967295, %s423_s12   ;;  %s298_s14 = sadd.s32 4294967294, %s423_s12   ;;  %s423_s12 = sphi %s450_s12, %s557_s12   ;;  %s419_s11 = sphi %s448_s11, %s556_s11   ;;  %s415_s10 = sphi %s446_s10, %s555_s10   ;;  %s411_s9 = sphi %s444_s9, %s554_s9  }
   0x4   : > { %s469_s15 = sadd.s32 1, %s423_s12   ;;  %s69_s16 = sadd.s32 1, %s419_s11 }
   0x5   : > { %s66_s17 = ssub.s32 %s423_s12, %s469_s15  ;;  %p79_p0 = scmp.ne.s32.totalorder %s419_s11, %s415_s10 }
   0x6   : > { %p67_p1 = scmp.eq.s32.totalorder %s66_s17, 0  ;;  %p80_p2 = scmp.eq.s32.totalorder %s465_s13, 1 }
   0x7   : > { %p85_p3 = scmp.ne.s32.totalorder %s415_s10, %s411_s9  ;;  %p86_p4 = scmp.eq.s32.totalorder %s298_s14, 1 }
   0x8   : > { %s480_s18 = scalar_select %p67_p1, %s419_s11, %s69_s16  }
   0x9   : > { %p482_p5 = por %p80_p2, %p79_p0  ;;  %p486_p6 = por %p86_p4, %p85_p3 }
   0xa   : > { %p301_p7 = scmp.ge.s32.totalorder %s423_s12, 1  ;;  %p114_p8 = scmp.lt.s32.totalorder %s423_s12, 3 }
   0xc   : > { %p115_p9 = pnand %p301_p7, %p114_p8 }
   0xd   : > { %p135_p10 = scmp.lt.s32.totalorder (!%p115_p9), %s465_s13, 1  ;;  %s132_s30 = sand.u32 (!%p115_p9), 1, %s415_s10  }
   0xe   : > { %118 = sbr.rel (%p115_p9) target bundleno = 357 (0x165), region = 28  ;;  %s302_s3 = sshll.u32 (!%p115_p9), %s132_s30, 3 }
   0xf   : > { %s134_s4 = scalar_lea.vmem (!%p115_p9), [#allocation2], %s302_s3  ;;  %s307_s6 = sshll.u32 (!%p115_p9), %s465_s13, 7 }
  0x10   : > { %s239_s5 = sshll.u32 (!%p115_p9), %s134_s4, 4  ;;  %s510_s14 = scalar_lea.hbm (!%p115_p9), %s551_s2, %s307_s6  ;;  %s505_s5 = int_to_ptr.vmem [resolvable:$true] %s239_s5 }
  0x11   : > { %s226_s16 = scalar_lea.sflag (!%p115_p9), [#allocation3], %s132_s30  ;;  %s363_s17 = scalar_lea.vmem (!%p115_p9), %s505_s5, 128 }
  0x12   : > { %p364_p11 = scmp.ne.s32.totalorder (!%p115_p9), %s505_s5, %s363_s17 }
  0x13   : > { %v149_v0 = vld [vmem:[%s550_s1 + $0x8] sm:$0xff]  ;;  %v425_v1 = vmov 0   ;;  %v426_v2 = vmov 0.0   ;;  %s136_s23 = scalar_select %p135_p10, %s465_s13, 1  ;;  %v148_v3 = vld [vmem:[%s550_s1] sm:$0xff]  ;;  %vm427_vm0 = vmmov 0   ;;  %v140_v5 = vlaneseq }
  0x14   : > { %362 = vset.pattern.permute.xlu0 %v425_v1  ;;  %313 = vmatprep.subr.mxu0 %v426_v2  ;;  %vm150_vm1 = vcmask 130048   ;;  %p365_p12 = pnand %p364_p11, %p482_p5  ;;  %s428_s13 = smov [#allocation2]  }
  0x15   : > { %314 = vmatpush3.msra.mxu0 %v149_v0  ;;  %s303_s26 = sshll.u32 %s136_s23, 3  ;;  %317 = vmatprep.mubr.msk.f32.mxu0 %vm427_vm0, %v426_v2  ;;  %v141_v6 = vand.u32 127, %v140_v5  ;;  %s367_s21 = sshll.u32 %s428_s13, 4  ;;  %s368_s21 = int_to_ptr.vmem [resolvable:$false] %s367_s21 }
  0x16   : > { %315 = vmatprep.subr.mxu0 %v426_v2  ;;  %s138_s29 = scalar_lea.vmem %s549_s0, %s303_s26  ;;  %p366_p13 = pneg %p365_p12 }
  0x17   : > { %316 = vmatpush3.msra.mxu0 %v148_v3  ;;  %v139_v4 = vld [vmem:[%s138_s29] sm:$0xff]  ;;  %s369_s22 = scalar_lea.vmem %s368_s21, 256  ;;  %p370_p0 = scmp.lt.s32.totalorder %s505_s5, %s368_s21 }
  0x18   : > { %143 = vperm.xlu0 %362, %v139_v4   ;;  %p371_p1 = scmp.lt.s32.totalorder %s369_s22, %s363_s17 }
  0x1a   : > { %p372_p2 = por %p371_p1, %p370_p0 }
  0x1c   : > { %p373_p3 = pnand %p372_p2, %p366_p13 }
  0x93   : > { %v144_v7 = vpop.permute.xlu0 %143 }
  0x94   : > { %vm145_vm2 = vcmp.eq.s32.totalorder %v141_v6, %v144_v7 }
  0x95   : > { %v304_v8 = vsel %vm145_vm2, 1.0, %v426_v2 }
  0x96   : > { %318 = vmatmul.mubr.msk.f32.vlgmr.msra.gmra.mxu0 %vm150_vm1, %v304_v8 }
 0x156   : > { %v220_v9 = vpop.f32.mrf.mxu0 }
 0x157   : > { %224 = vst [vmem:[%s134_s4] sm:$0xff] %v220_v9 }
 0x158   : > { %v319_v10 = vpop.f32.mrf.mxu0 }
 0x159   : > { %376 = shalt.err (!%p373_p3)
}
 0x15a   : > { %s377_s23 = scalar_lea.hbm %s510_s14, 128  ;;  %s381_s26 = scalar_lea.hbm %s551_s2, 256 }
 0x15b   : > { %p378_p4 = scmp.ne.s32.totalorder %s510_s14, %s377_s23  ;;  %p382_p9 = scmp.lt.s32.totalorder %s510_s14, %s551_s2 }
 0x15c   : > { %p383_p10 = scmp.lt.s32.totalorder %s381_s26, %s377_s23 }
 0x15d   : > { %p379_p7 = pnand %p378_p4, %p482_p5 }
 0x15e   : > { %p384_p11 = por %p383_p10, %p382_p9 }
 0x15f   : > { %p380_p8 = pneg %p379_p7 }
 0x161   : > { %p385_p12 = pnand %p384_p11, %p380_p8 }
 0x163   : > { %388 = shalt.err (!%p385_p12)
}
 0x164   : > { %320 = dma.vmem_to_hbm [thread:$0]  (%p482_p5), %s505_s5, 128, %s510_s14, %s226_s16  }
 0x165 PF: > { %p326_p13 = scmp.ge.s32.totalorder %s423_s12, 2  ;;  %s251_s29 = sand.u32 1, %s411_s9  }
 0x166   : > { %s252_s30 = scalar_lea.sflag [#allocation3], %s251_s29 }
 0x167   : > { %p323_p0 = pnand %p326_p13, %p486_p6 }
 0x169   : > { %p324_p1 = pneg %p323_p0 }
 0x16b   : > { %406 = dma.done.wait (%p324_p1), %s252_s30, 128  }
 0x16c   : > { %408 = vsyncadd (%p324_p1), %s252_s30, 4294967168  ;;  %p12_p2 = scmp.ge.s32.totalorder %s469_s15, 4   ;;  %s554_s9 = smov %s415_s10 }
 0x16d   : > { %s555_s10 = smov %s419_s11  ;;  %s556_s11 = smov %s480_s18 }
 0x16e   : > { %s557_s12 = smov %s469_s15  ;;  %14 = sbr.rel (!%p12_p2) target bundleno = 3 (0x3), region = 63 }
 0x173   :  { %257 = vsyncpa [#allocation3], 1 }
 0x174   :  { %259 = vsyncpa [#allocation3 + $0x1], 1 }

</bundles_post_ra>
